<compile_context>
chip_gen: v5e
topology: v5e:2x2
jax: 0.10.0
libtpu: 0.0.40
codegen_flags: <defaults>
</compile_context>

<pallas_src>
import functools

import numpy as np
import jax
import jax.numpy as jnp
from jax.experimental import pallas as pl
from jax.experimental.pallas import tpu as pltpu


def _round_up(n, m):
    return ((n + m - 1) // m) * m


# ----------------------------------------------------------------------------
# Static helpers (numpy; permutation matrices & bit tables are weight-free)
# ----------------------------------------------------------------------------
def _cnot_np(nq, ctrl, tgt):
    # PennyLane wire ordering: wire 0 is the most-significant bit.
    D = 2 ** nq
    U = np.zeros((D, D), dtype=np.float64)
    for b in range(D):
        bits = [(b >> (nq - 1 - w)) & 1 for w in range(nq)]
        if bits[ctrl] == 1:
            bits[tgt] ^= 1
        b2 = sum(bit << (nq - 1 - w) for w, bit in enumerate(bits))
        U[b2, b] = 1.0
    return U


def _ring_cnot_np(nq):
    D = 2 ** nq
    ring = np.eye(D, dtype=np.float64)
    if nq == 2:
        ring = _cnot_np(nq, 0, 1) @ ring
    else:
        for i in range(nq):
            ring = _cnot_np(nq, i, (i + 1) % nq) @ ring
    return ring


# ----------------------------------------------------------------------------
# JAX-side constant-slab construction (jit-able, differentiable in w)
# ----------------------------------------------------------------------------
def build_slab(w_flat, nq, nl):
    """Return an f32 slab of shape (3*D, lane):
         rows [0, D)   cols [0, 2D)  : [Re(U')^T | Im(U')^T]  (phase-folded U)
         rows [D, 3D)  cols [0, lane): stacked Z-sign matrix [z; z], zero-padded
    """
    D = 2 ** nq
    lane = max(128, _round_up(2 * D, 128))
    w = w_flat.reshape(nl, nq).astype(jnp.float32)

    ring = jnp.asarray(_ring_cnot_np(nq).astype(np.complex64))   # static

    U = jnp.eye(D, dtype=jnp.complex64)
    for l in range(nl):
        rot = jnp.ones((1, 1), dtype=jnp.complex64)
        for i in range(nq):
            cc = jnp.cos(w[l, i] * 0.5).astype(jnp.complex64)
            ss = (-1j) * jnp.sin(w[l, i] * 0.5).astype(jnp.complex64)
            rx = jnp.stack([jnp.stack([cc, ss]), jnp.stack([ss, cc])])
            rot = jnp.kron(rot, rx)
        U = ring @ (rot @ U)

    # Fold the embedding phase (-i)^popcount(b) into U:  U' = U @ diag(phase)
    pop = np.array([bin(b).count("1") for b in range(D)])
    phase = np.power(-1j, pop).astype(np.complex64)              # (D,)
    Up = U * jnp.asarray(phase)[None, :]

    ucat = jnp.concatenate([jnp.real(Up).T, jnp.imag(Up).T], axis=1)  # (D, 2D)
    top = jnp.pad(ucat.astype(jnp.float32), ((0, 0), (0, lane - 2 * D)))

    zsign = np.array([[1.0 - 2.0 * ((b >> (nq - 1 - i)) & 1) for i in range(nq)]
                      for b in range(D)], dtype=np.float32)           # (D, nq)
    z2pad = np.zeros((2 * D, lane), dtype=np.float32)
    z2pad[:, :nq] = np.vstack([zsign, zsign])
    bot = jnp.asarray(z2pad)

    return jnp.concatenate([top, bot], axis=0)                       # (3D, lane)


# ----------------------------------------------------------------------------
# Pallas kernel: embedding magnitudes -> 1 MXU matmul -> squared -> Z reduce
# ----------------------------------------------------------------------------
def qnet_kernel(x_ref, slab_ref, o_ref, *, nq, D):
    x = x_ref[...]                                   # (tb, nq)
    tb = x.shape[0]

    half = 0.5 * x
    c = jnp.cos(half)                                # (tb, nq)
    s = jnp.sin(half)                                # (tb, nq)

    # Product-state magnitudes: prod_i (cos if bit_i(b)==0 else sin)
    idx = jax.lax.broadcasted_iota(jnp.int32, (tb, D), 1)
    mag = None
    for i in range(nq):                              # nq static -> unrolled
        bit = (idx >> (nq - 1 - i)) & 1
        f = jnp.where(bit == 1, s[:, i:i + 1], c[:, i:i + 1])   # (tb, D)
        mag = f if mag is None else mag * f

    ucat = slab_ref[0:D, 0:2 * D]                    # (D, 2D) = [Re(U')^T | Im(U')^T]
    zpad = slab_ref[D:3 * D, :]                      # (2D, lane) = [z; z] zero-padded

    # psi (split re/im) in one MXU matmul; probs @ z fused as (res*res) @ [z;z]
    res = jnp.dot(mag, ucat, preferred_element_type=jnp.float32)     # (tb, 2D)
    sq = res * res
    o_ref[...] = jnp.dot(sq, zpad, preferred_element_type=jnp.float32)  # (tb, lane)


def qnet_pallas_apply(x, slab, nq):
    x = x.astype(jnp.float32)
    B = x.shape[0]
    D = slab.shape[0] // 3
    lane = slab.shape[1]

    tb = min(256, _round_up(B, 8))
    Bp = _round_up(B, tb)
    if Bp != B:
        x = jnp.pad(x, ((0, Bp - B), (0, 0)))

    out = pl.pallas_call(
        functools.partial(qnet_kernel, nq=nq, D=D),
        out_shape=jax.ShapeDtypeStruct((Bp, lane), jnp.float32),
        grid=(Bp // tb,),
        in_specs=[pl.BlockSpec((tb, nq), lambda i: (i, 0)),
                  pl.BlockSpec((3 * D, lane), lambda i: (0, 0))],   # resident slab
        out_specs=pl.BlockSpec((tb, lane), lambda i: (i, 0)),
        compiler_params=pltpu.CompilerParams(
            dimension_semantics=("parallel",)),
    )(x, slab)
    return out[:B, :nq]


@functools.partial(jax.jit, static_argnames=("nq", "nl"))
def qnet_forward(x, w_flat, *, nq, nl):
    """Full forward of Net: x (B, nq), w_flat (nq*nl,) -> y (B, nq)."""
    slab = build_slab(w_flat, nq, nl)
    return qnet_pallas_apply(x, slab, nq)


# ----------------------------------------------------------------------------
# Pure numpy reference (complex128; independent of the jnp builder)
# ----------------------------------------------------------------------------
def _rx_np(theta):
    c, s = np.cos(theta / 2.0), np.sin(theta / 2.0)
    return np.array([[c, -1j * s], [-1j * s, c]], dtype=np.complex128)


def build_entangler_unitary(w_flat, nq, nl):
    w = np.asarray(w_flat, dtype=np.float64).reshape(nl, nq)
    D = 2 ** nq
    U = np.eye(D, dtype=np.complex128)
    ring = _ring_cnot_np(nq)
    for l in range(nl):
        rot = functools.reduce(np.kron, [_rx_np(w[l, i]) for i in range(nq)])
        U = ring @ (rot @ U)
    return U


def reference_forward(x_np, w_flat, nq, nl):
    U = build_entangler_unitary(w_flat, nq, nl)
    D = 2 ** nq
    B = x_np.shape[0]
    out = np.zeros((B, nq), dtype=np.float64)
    for bi in range(B):
        amps = np.ones(1, dtype=np.complex128)
        for w in range(nq):
            a = np.array([np.cos(x_np[bi, w] / 2.0),
                          -1j * np.sin(x_np[bi, w] / 2.0)])
            amps = np.kron(amps, a)
        psi = U @ amps
        probs = np.abs(psi) ** 2
        for w in range(nq):
            z = np.array([1 - 2 * ((b >> (nq - 1 - w)) & 1) for b in range(D)],
                         dtype=np.float64)
            out[bi, w] = probs @ z
    return out


if __name__ == "__main__":
    nq, nl = 4, 2          # 4 qubits, 2 entangler layers  (D = 16 amplitudes)
    B = 8                  # batch

    key = jax.random.PRNGKey(0)
    kx, kw = jax.random.split(key)
    x = jax.random.uniform(kx, (B, nq), dtype=jnp.float32,
                           minval=0.0, maxval=float(np.pi))
    # TorchLayer default init: Uniform(0, 2*pi) over the flat weight vector.
    w_flat = jax.random.uniform(kw, (nq * nl,), dtype=jnp.float32,
                                minval=0.0, maxval=2.0 * float(np.pi))

    y = qnet_forward(x, w_flat, nq=nq, nl=nl)
    y = jax.block_until_ready(y)

    y_ref = reference_forward(np.asarray(x, dtype=np.float64),
                              np.asarray(w_flat, dtype=np.float64), nq, nl)
    np.testing.assert_allclose(np.asarray(y), y_ref, atol=2e-3, rtol=2e-3)

    print("KERNEL_OK")
</pallas_src>

<mosaic_0001>
module attributes {stable_mosaic.version = 11 : i64} {
  func.func @qnet_kernel(%arg0: i32, %arg1: memref<8x4xf32, #tpu.memory_space<vmem>>, %arg2: memref<48x128xf32, #tpu.memory_space<vmem>>, %arg3: memref<8x128xf32, #tpu.memory_space<vmem>>) attributes {dimension_semantics = [#tpu.dimension_semantics<parallel>], iteration_bounds = array<i64: 1>, scalar_prefetch = 0 : i64, scratch_operands = 0 : i64, tpu.core_type = #tpu.core_type<tc>, window_params = [{transform_indices = @transform_0, window_bounds = array<i64: 8, 4>}, {pipeline_mode = #tpu.pipeline_mode<synchronous>, transform_indices = @transform_1, window_bounds = array<i64: 48, 128>}, {transform_indices = @transform_2, window_bounds = array<i64: 8, 128>}]} {
    %c0 = arith.constant 0 : index
    %c0_0 = arith.constant 0 : index
    %0 = vector.load %arg1[%c0, %c0_0] : memref<8x4xf32, #tpu.memory_space<vmem>>, vector<8x4xf32>
    %cst = arith.constant 5.000000e-01 : f32
    %1 = vector.broadcast %cst : f32 to vector<8x4xf32>
    %2 = arith.mulf %1, %0 : vector<8x4xf32>
    %3 = math.cos %2 : vector<8x4xf32>
    %4 = math.sin %2 : vector<8x4xf32>
    %5 = tpu.iota {dimensions = array<i32: 1>} : vector<8x16xi32>
    %c3_i32 = arith.constant 3 : i32
    %6 = vector.broadcast %c3_i32 : i32 to vector<8x16xi32>
    %7 = arith.shrsi %5, %6 : vector<8x16xi32>
    %c1_i32 = arith.constant 1 : i32
    %8 = vector.broadcast %c1_i32 : i32 to vector<8x16xi32>
    %9 = arith.andi %7, %8 : vector<8x16xi32>
    %c1_i32_1 = arith.constant 1 : i32
    %10 = vector.broadcast %c1_i32_1 : i32 to vector<8x16xi32>
    %11 = arith.cmpi eq, %9, %10 : vector<8x16xi32>
    %12 = vector.extract_strided_slice %4 {offsets = [0, 0], sizes = [8, 1], strides = [1, 1]} : vector<8x4xf32> to vector<8x1xf32>
    %13 = vector.extract_strided_slice %3 {offsets = [0, 0], sizes = [8, 1], strides = [1, 1]} : vector<8x4xf32> to vector<8x1xf32>
    %14 = vector.shape_cast %12 : vector<8x1xf32> to vector<8x1xf32>
    %15 = vector.broadcast %14 : vector<8x1xf32> to vector<8x16xf32>
    %16 = vector.shape_cast %13 : vector<8x1xf32> to vector<8x1xf32>
    %17 = vector.broadcast %16 : vector<8x1xf32> to vector<8x16xf32>
    %18 = arith.select %11, %15, %17 : vector<8x16xi1>, vector<8x16xf32>
    %c2_i32 = arith.constant 2 : i32
    %19 = vector.broadcast %c2_i32 : i32 to vector<8x16xi32>
    %20 = arith.shrsi %5, %19 : vector<8x16xi32>
    %c1_i32_2 = arith.constant 1 : i32
    %21 = vector.broadcast %c1_i32_2 : i32 to vector<8x16xi32>
    %22 = arith.andi %20, %21 : vector<8x16xi32>
    %c1_i32_3 = arith.constant 1 : i32
    %23 = vector.broadcast %c1_i32_3 : i32 to vector<8x16xi32>
    %24 = arith.cmpi eq, %22, %23 : vector<8x16xi32>
    %25 = vector.extract_strided_slice %4 {offsets = [0, 1], sizes = [8, 1], strides = [1, 1]} : vector<8x4xf32> to vector<8x1xf32>
    %26 = vector.extract_strided_slice %3 {offsets = [0, 1], sizes = [8, 1], strides = [1, 1]} : vector<8x4xf32> to vector<8x1xf32>
    %27 = vector.shape_cast %25 : vector<8x1xf32> to vector<8x1xf32>
    %28 = vector.broadcast %27 : vector<8x1xf32> to vector<8x16xf32>
    %29 = vector.shape_cast %26 : vector<8x1xf32> to vector<8x1xf32>
    %30 = vector.broadcast %29 : vector<8x1xf32> to vector<8x16xf32>
    %31 = arith.select %24, %28, %30 : vector<8x16xi1>, vector<8x16xf32>
    %32 = arith.mulf %18, %31 : vector<8x16xf32>
    %c1_i32_4 = arith.constant 1 : i32
    %33 = vector.broadcast %c1_i32_4 : i32 to vector<8x16xi32>
    %34 = arith.shrsi %5, %33 : vector<8x16xi32>
    %c1_i32_5 = arith.constant 1 : i32
    %35 = vector.broadcast %c1_i32_5 : i32 to vector<8x16xi32>
    %36 = arith.andi %34, %35 : vector<8x16xi32>
    %c1_i32_6 = arith.constant 1 : i32
    %37 = vector.broadcast %c1_i32_6 : i32 to vector<8x16xi32>
    %38 = arith.cmpi eq, %36, %37 : vector<8x16xi32>
    %39 = vector.extract_strided_slice %4 {offsets = [0, 2], sizes = [8, 1], strides = [1, 1]} : vector<8x4xf32> to vector<8x1xf32>
    %40 = vector.extract_strided_slice %3 {offsets = [0, 2], sizes = [8, 1], strides = [1, 1]} : vector<8x4xf32> to vector<8x1xf32>
    %41 = vector.shape_cast %39 : vector<8x1xf32> to vector<8x1xf32>
    %42 = vector.broadcast %41 : vector<8x1xf32> to vector<8x16xf32>
    %43 = vector.shape_cast %40 : vector<8x1xf32> to vector<8x1xf32>
    %44 = vector.broadcast %43 : vector<8x1xf32> to vector<8x16xf32>
    %45 = arith.select %38, %42, %44 : vector<8x16xi1>, vector<8x16xf32>
    %46 = arith.mulf %32, %45 : vector<8x16xf32>
    %c0_i32 = arith.constant 0 : i32
    %47 = vector.broadcast %c0_i32 : i32 to vector<8x16xi32>
    %48 = arith.shrsi %5, %47 : vector<8x16xi32>
    %c1_i32_7 = arith.constant 1 : i32
    %49 = vector.broadcast %c1_i32_7 : i32 to vector<8x16xi32>
    %50 = arith.andi %48, %49 : vector<8x16xi32>
    %c1_i32_8 = arith.constant 1 : i32
    %51 = vector.broadcast %c1_i32_8 : i32 to vector<8x16xi32>
    %52 = arith.cmpi eq, %50, %51 : vector<8x16xi32>
    %53 = vector.extract_strided_slice %4 {offsets = [0, 3], sizes = [8, 1], strides = [1, 1]} : vector<8x4xf32> to vector<8x1xf32>
    %54 = vector.extract_strided_slice %3 {offsets = [0, 3], sizes = [8, 1], strides = [1, 1]} : vector<8x4xf32> to vector<8x1xf32>
    %55 = vector.shape_cast %53 : vector<8x1xf32> to vector<8x1xf32>
    %56 = vector.broadcast %55 : vector<8x1xf32> to vector<8x16xf32>
    %57 = vector.shape_cast %54 : vector<8x1xf32> to vector<8x1xf32>
    %58 = vector.broadcast %57 : vector<8x1xf32> to vector<8x16xf32>
    %59 = arith.select %52, %56, %58 : vector<8x16xi1>, vector<8x16xf32>
    %60 = arith.mulf %46, %59 : vector<8x16xf32>
    %c0_9 = arith.constant 0 : index
    %c0_10 = arith.constant 0 : index
    %61 = vector.load %arg2[%c0_9, %c0_10] : memref<48x128xf32, #tpu.memory_space<vmem>>, vector<16x32xf32>
    %c16 = arith.constant 16 : index
    %c0_11 = arith.constant 0 : index
    %62 = vector.load %arg2[%c16, %c0_11] : memref<48x128xf32, #tpu.memory_space<vmem>>, vector<32x128xf32>
    %cst_12 = arith.constant dense<0.000000e+00> : vector<8x32xf32>
    %63 = tpu.matmul %60, %61, %cst_12 {dimension_numbers = #tpu.dot_dimension_numbers<[1], [0], [0], [1], [0, 0, 1, 1], [], []>} : vector<8x16xf32>, vector<16x32xf32>, vector<8x32xf32> -> vector<8x32xf32>
    %64 = arith.mulf %63, %63 : vector<8x32xf32>
    %cst_13 = arith.constant dense<0.000000e+00> : vector<8x128xf32>
    %65 = tpu.matmul %64, %62, %cst_13 {dimension_numbers = #tpu.dot_dimension_numbers<[1], [0], [0], [1], [0, 0, 1, 1], [], []>} : vector<8x32xf32>, vector<32x128xf32>, vector<8x128xf32> -> vector<8x128xf32>
    %c0_14 = arith.constant 0 : index
    %c0_15 = arith.constant 0 : index
    %66 = vector.load %arg3[%c0_14, %c0_15] : memref<8x128xf32, #tpu.memory_space<vmem>>, vector<8x128xf32>
    tpu.vector_store %arg3[%c0_14, %c0_15], %65 {strides = array<i32>} : memref<8x128xf32, #tpu.memory_space<vmem>>, vector<8x128xf32>,
    return
  }
  func.func @transform_0(%arg0: i32) -> (i32, i32) {
    %c0_i32 = arith.constant 0 : i32
    %c0_i32_0 = arith.constant 0 : i32
    return %arg0, %c0_i32 : i32, i32
  }
  func.func @transform_1(%arg0: i32) -> (i32, i32) {
    %c0_i32 = arith.constant 0 : i32
    %c0_i32_0 = arith.constant 0 : i32
    %c0_i32_1 = arith.constant 0 : i32
    return %c0_i32, %c0_i32_0 : i32, i32
  }
  func.func @transform_2(%arg0: i32) -> (i32, i32) {
    %c0_i32 = arith.constant 0 : i32
    %c0_i32_0 = arith.constant 0 : i32
    return %arg0, %c0_i32 : i32, i32
  }
}

</mosaic_0001>

<bundles_post_ra>
// kernel: qnet_forward.1
= control target key start
LH: loop header
LB: loop body
LE: loop exit
PB: predicated region body
PF: predicated region fallthrough
CT: control target
= control target key end

     0   :  { %v459_v0 = vmov 1   ;;  %v460_v1 = vmov 0   ;;  %v461_v15 = vmov 683565275   ;;  %v462_v17 = vmov 2475754826   ;;  %s559_s0 = inlined_call_operand.vmem [shape: f32[8,4], index: 0, kind: input, shape index: {}]   ;;  %s560_s1 = inlined_call_operand.vmem [shape: f32[48,128], index: 1, kind: input, shape index: {}]   ;;  %s561_s2 = inlined_call_operand.vmem [shape: f32[8,128], index: 2, kind: output, shape index: {}]  }
   0x1   :  { %455 = vset.pattern.permute.xlu1 %v459_v0  ;;  %454 = vset.pattern.permute.xlu0 %v460_v1  ;;  %v11_v2 = vld [vmem:[%s559_s0] sm:$0xff]  ;;  %v463_v19 = vmov 2131351028   ;;  %v464_v21 = vmov 2102212464  }
   0x2   :  { %v488_v3 = vmul.f32 0.5, %v11_v2  ;;  %v465_v23 = vmov 920167782   ;;  %v466_v29 = vmov 1326507024  }
   0x4   :  { %v16_v4 = vand.u32 2139095040, %v488_v3  ;;  %v13_v6 = vand.u32 2147483647, %v488_v3  ;;  %vm15_vm12 = vcmp.lt.s32.totalorder %v488_v3, 0 }
   0x6   :  { %v17_v5 = vshrl.u32 %v16_v4, 23  ;;  %v20_v9 = vand.u32 8388607, %v13_v6  ;;  %vm14_vm13 = vcmp.le.f32.partialorder %v13_v6, 0.7853982 }
   0x8   :  { %v436_v7 = vadd.s32 4294967169, %v17_v5  ;;  %v21_v12 = vor.u32 8388608, %v20_v9 }
   0xa   :  { %v23_v8 = vadd.s32 1, %v436_v7  ;;  %v497_v31 = vshll.u32 %v21_v12, 8 }
   0xc   :  { %vm24_vm0 = vcmp.gt.s32.totalorder %v23_v8, 0  ;;  %v62_v43 = vand.u32 65535, %v497_v31  ;;  %v63_v44 = vshrl.u32 %v497_v31, 16 }
   0xd   :  { %v25_v10 = vsel %vm24_vm0, %v23_v8, 0 }
   0xe   :  { %v27_v11 = vand.u32 31, %v25_v10  ;;  %v494_v13 = vshrl.u32 %v25_v10, 5 }
  0x10   :  { %v28_v14 = vsub.s32 32, %v27_v11  ;;  %v30_v16 = vshll.u32 %v461_v15, %v27_v11  ;;  %v33_v18 = vshll.u32 %v462_v17, %v27_v11  ;;  %v36_v20 = vshll.u32 %v463_v19, %v27_v11 }
  0x11   :  { %v39_v22 = vshll.u32 %v464_v21, %v27_v11  ;;  %v42_v24 = vshll.u32 %v465_v23, %v27_v11  ;;  %vm45_vm1 = vcmp.lt.s32.totalorder %v494_v13, 1  ;;  %vm48_vm2 = vcmp.lt.s32.totalorder %v494_v13, 4 }
  0x12   :  { %v31_v25 = vshrl.u32 %v462_v17, %v28_v14  ;;  %v34_v26 = vshrl.u32 %v463_v19, %v28_v14  ;;  %v37_v27 = vshrl.u32 %v464_v21, %v28_v14  ;;  %v40_v28 = vshrl.u32 %v465_v23, %v28_v14 }
  0x13   :  { %v43_v30 = vshrl.u32 %v466_v29, %v28_v14  ;;  %vm47_vm3 = vcmp.lt.s32.totalorder %v494_v13, 3  ;;  %vm46_vm4 = vcmp.lt.s32.totalorder %v494_v13, 2  ;;  %v29_v51 = vshrl.u32 %v461_v15, %v28_v14 }
  0x14   :  { %v32_v32 = vor.u32 %v31_v25, %v30_v16  ;;  %v35_v33 = vor.u32 %v34_v26, %v33_v18  ;;  %v38_v34 = vor.u32 %v37_v27, %v36_v20  ;;  %v41_v35 = vor.u32 %v40_v28, %v39_v22 }
  0x15   :  { %v44_v36 = vor.u32 %v43_v30, %v42_v24 }
  0x16   :  { %v53_v37 = vsel %vm45_vm1, %v32_v32, %v35_v33  ;;  %v57_v38 = vsel %vm45_vm1, %v35_v33, %v38_v34  ;;  %v54_v39 = vsel %vm48_vm2, %v41_v35, 920167782  ;;  %v49_v0 = vsel %vm45_vm1, %v29_v51, %v32_v32 }
  0x17   :  { %v58_v40 = vsel %vm48_vm2, %v44_v36, 1326507024  ;;  %v55_v41 = vsel %vm47_vm3, %v38_v34, %v54_v39  ;;  %v50_v4 = vsel %vm48_vm2, %v38_v34, 2102212464  ;;  %vm156_vm1 = vweird.f32 %v488_v3 }
  0x18   :  { %v59_v42 = vsel %vm47_vm3, %v41_v35, %v58_v40  ;;  %v56_v45 = vsel %vm46_vm4, %v53_v37, %v55_v41  ;;  %v51_v15 = vsel %vm47_vm3, %v35_v33, %v50_v4 }
  0x19   :  { %v60_v46 = vsel %vm46_vm4, %v57_v38, %v59_v42  ;;  %v86_v49 = vand.u32 65535, %v56_v45  ;;  %v87_v50 = vshrl.u32 %v56_v45, 16  ;;  %v52_v23 = vsel %vm46_vm4, %v49_v0, %v51_v15 }
  0x1a   :  { %v64_v47 = vand.u32 65535, %v60_v46  ;;  %v65_v48 = vshrl.u32 %v60_v46, 16  ;;  %v106_v27 = vmul.u32 %v497_v31, %v52_v23  ;;  %v467_v0 = vmov 2  }
  0x1b   :  { %v88_v55 = vmul.u32 %v86_v49, %v62_v43  ;;  %v89_v56 = vmul.u32 %v87_v50, %v62_v43  ;;  %v90_v57 = vmul.u32 %v86_v49, %v63_v44  ;;  %v91_v61 = vmul.u32 %v87_v50, %v63_v44  ;;  %456 = vset.pattern.permute.xlu2 %v467_v0 }
  0x1c   :  { %v66_v52 = vmul.u32 %v64_v47, %v62_v43  ;;  %v67_v53 = vmul.u32 %v65_v48, %v62_v43  ;;  %v68_v54 = vmul.u32 %v64_v47, %v63_v44  ;;  %v69_v58 = vmul.u32 %v65_v48, %v63_v44 }
  0x1d   :  { %v92_v62 = vshll.u32 %v89_v56, 16  ;;  %v94_v63 = vshll.u32 %v90_v57, 16  ;;  %v93_v12 = vshrl.u32 %v89_v56, 16  ;;  %v95_v19 = vshrl.u32 %v90_v57, 16 }
  0x1e   :  { %v70_v59 = vshll.u32 %v67_v53, 16  ;;  %v72_v60 = vshll.u32 %v68_v54, 16  ;;  %v71_v8 = vshrl.u32 %v67_v53, 16  ;;  %v73_v16 = vshrl.u32 %v68_v54, 16 }
  0x1f   :  { %vm96_vm6 = vc.u32 %v88_v55, %v92_v62  ;;  %v98_v7 = vadd.s32 %v92_v62, %v88_v55  ;;  %v468_v23 = vmov 3  }
  0x20   :  { %vm74_vm5 = vc.u32 %v66_v52, %v70_v59  ;;  %v76_v2 = vadd.s32 %v70_v59, %v66_v52  ;;  %v97_v10 = vsel %vm96_vm6, 1, %v460_v1 }
  0x21   :  { %v75_v5 = vsel %vm74_vm5, 1, %v460_v1  ;;  %v99_v14 = vadd.s32 %v97_v10, %v91_v61  ;;  %vm100_vm8 = vc.u32 %v98_v7, %v94_v63  ;;  %v102_v22 = vadd.s32 %v98_v7, %v94_v63 }
  0x22   :  { %v77_v9 = vadd.s32 %v75_v5, %v69_v58  ;;  %vm78_vm7 = vc.u32 %v76_v2, %v72_v60  ;;  %v101_v18 = vsel %vm100_vm8, 1, %v460_v1 }
  0x23   :  { %v79_v11 = vsel %vm78_vm7, 1, %v460_v1  ;;  %v103_v20 = vadd.s32 %v101_v18, %v99_v14 }
  0x24   :  { %v81_v17 = vadd.s32 %v79_v11, %v77_v9 }
  0x25   :  { %v104_v24 = vadd.s32 %v103_v20, %v93_v12 }
  0x26   :  { %v82_v21 = vadd.s32 %v81_v17, %v71_v8 }
  0x27   :  { %v105_v26 = vadd.s32 %v104_v24, %v95_v19  ;;  %v376_v24 = vld [vmem:[%s560_s1] sm:$0xff] }
  0x28   :  { %v83_v25 = vadd.s32 %v82_v21, %v73_v16 }
  0x29   :  { %v109_v28 = vadd.s32 1, %v105_v26 }
  0x2a   :  { %vm108_vm9 = vc.u32 %v83_v25, %v102_v22  ;;  %v107_v13 = vadd.s32 %v102_v22, %v83_v25  ;;  %v381_v25 = vld [vmem:[%s560_s1 + $0x28] sm:$0xff] }
  0x2b   :  { %v110_v29 = vsel %vm108_vm9, %v109_v28, %v105_v26  ;;  %v380_v26 = vld [vmem:[%s560_s1 + $0x20] sm:$0xff]  ;;  %423 = vmatpush.msra.mxu1 %v381_v25  ;;  %vm382_vm9 = vcmask 130048  }
  0x2c   :  { %v111_v30 = vadd.s32 %v110_v29, %v106_v27  ;;  %v322_v27 = vlaneseq }
  0x2d   :  { %424 = vmatpush.msra.mxu1 %v380_v26 }
  0x2e   :  { %v112_v32 = vadd.s32 536870912, %v111_v30  ;;  %v323_v28 = vand.u32 127, %v322_v27 }
  0x30   :  { %v113_v33 = vshrl.u32 %v112_v32, 30  ;;  %v338_v29 = vshra.s32 %v323_v28, 2 }
  0x32   :  { %v114_v34 = vshll.u32 %v113_v33, 30  ;;  %v137_v50 = vsub.s32 4, %v113_v33 }
  0x34   :  { %v115_v1 = vsub.s32 %v111_v30, %v114_v34  ;;  %v138_v53 = vsel %vm15_vm12, %v137_v50, %v113_v33  ;;  %v324_v30 = vshra.s32 %v323_v28, 3  ;;  %v378_v50 = vld [vmem:[%s560_s1 + $0x10] sm:$0xff] }
  0x35   :  { %v140_v56 = vsel %vm14_vm13, 0, %v138_v53 }
  0x36   :  { %vm116_vm10 = vcmp.lt.s32.totalorder %v115_v1, 0  ;;  %v117_v35 = vsub.s32 0, %v115_v1  ;;  %v311_v61 = vadd.s32 3, %v140_v56  ;;  %v157_v10 = vand.u32 3, %v140_v56 }
  0x38   :  { %v118_v36 = vsel %vm116_vm10, %v117_v35, %v115_v1  ;;  %v312_v5 = vand.u32 3, %v311_v61  ;;  %vm159_vm2 = vcmp.eq.s32.totalorder %v157_v10, 0  ;;  %vm162_vm3 = vcmp.eq.s32.totalorder %v157_v10, 2 }
  0x39   :  { %v119_v37 = vclz %v118_v36  ;;  %vm158_vm4 = vcmp.lt.s32.totalorder %v157_v10, 2  ;;  %v325_v35 = vand.u32 1, %v324_v30  ;;  %v351_v36 = vshra.s32 %v323_v28, 1 }
  0x3a   :  { %vm317_vm14 = vcmp.eq.s32.totalorder %v312_v5, 2  ;;  %vm314_vm15 = vcmp.eq.s32.totalorder %v312_v5, 0  ;;  %vm313_vm0 = vcmp.lt.s32.totalorder %v312_v5, 2  ;;  %vm407_vm10 = vcmask 261120  }
  0x3b   :  { %v437_v38 = vadd.s32 4294967294, %v119_v37  ;;  %vm326_vm6 = vcmp.eq.s32.totalorder %v325_v35, 1 }
  0x3d   :  { %vm438_vm11 = vcmp.lt.s32.totalorder %v437_v38, 0 }
  0x3e   :  { %v122_v39 = vsel %vm438_vm11, 0, %v437_v38 }
  0x3f   :  { %v123_v40 = vsub.s32 32, %v122_v39  ;;  %v124_v41 = vshll.u32 %v115_v1, %v122_v39  ;;  %v127_v42 = vsub.s32 4294967266, %v122_v39  ;;  %v339_v1 = vand.u32 1, %v338_v29 }
  0x41   :  { %v125_v43 = vshrl.u32 %v107_v13, %v123_v40  ;;  %v128_v31 = vadd.s32 127, %v127_v42  ;;  %vm340_vm5 = vcmp.eq.s32.totalorder %v339_v1, 1  ;;  %v352_v13 = vand.u32 1, %v351_v36 }
  0x43   :  { %v126_v44 = vor.u32 %v125_v43, %v124_v41  ;;  %v129_v45 = vshll.u32 %v128_v31, 23  ;;  %v364_v41 = vand.u32 1, %v323_v28  ;;  %vm353_vm7 = vcmp.eq.s32.totalorder %v352_v13, 1 }
  0x45   :  { %v130_v46 = vor.u32 4788187, %v129_v45  ;;  %v133_v47 = vcvt.s32.f32 %v126_v44  ;;  %vm365_vm8 = vcmp.eq.s32.totalorder %v364_v41, 1 }
  0x47   :  { %v131_v48 = vand.u32 2147483647, %v130_v46 }
  0x49   :  { %v134_v49 = vmul.f32 %v133_v47, %v131_v48 }
  0x4b   :  { %v135_v51 = vxor.u32 2147483648, %v134_v49 }
  0x4d   :  { %v136_v52 = vsel %vm15_vm12, %v135_v51, %v134_v49  ;;  %v379_v49 = vld [vmem:[%s560_s1 + $0x18] sm:$0xff] }
  0x4e   :  { %v139_v54 = vsel %vm14_vm13, %v488_v3, %v136_v52  ;;  %v377_v3 = vld [vmem:[%s560_s1 + $0x8] sm:$0xff]  ;;  %425 = vmatpush.msra.mxu1 %v379_v49 }
  0x4f   :  { %v141_v55 = vmul.f32 %v139_v54, %v139_v54  ;;  %400 = vmatpush.msra.mxu0 %v377_v3 }
  0x50   :  { %426 = vmatpush.msra.mxu1 %v378_v50 }
  0x51   :  { %v142_v57 = vmul.f32 -0.001358992, %v141_v55  ;;  %v149_v58 = vmul.f32 -0.00019511016, %v141_v55  ;;  %401 = vmatpush.msra.mxu0 %v376_v24 }
  0x53   :  { %v143_v59 = vadd.f32 0.041655596, %v142_v57  ;;  %v150_v60 = vadd.f32 0.008332121, %v149_v58 }
  0x55   :  { %v144_v62 = vmul.f32 %v143_v59, %v141_v55  ;;  %v151_v63 = vmul.f32 %v150_v60, %v141_v55 }
  0x57   :  { %v145_v2 = vadd.f32 -0.4999988, %v144_v62  ;;  %v152_v4 = vadd.f32 -0.16666654, %v151_v63 }
  0x59   :  { %v146_v6 = vmul.f32 %v145_v2, %v141_v55  ;;  %v153_v7 = vmul.f32 %v152_v4, %v141_v55 }
  0x5b   :  { %v147_v8 = vadd.f32 1.0, %v146_v6  ;;  %v154_v9 = vadd.f32 1.0, %v153_v7 }
  0x5d   :  { %v155_v11 = vmul.f32 %v154_v9, %v139_v54  ;;  %v163_v12 = vxor.u32 2147483648, %v147_v8 }
  0x5f   :  { %v160_v14 = vxor.u32 2147483648, %v155_v11  ;;  %v319_v15 = vsel %vm317_vm14, %v163_v12, %v155_v11  ;;  %v164_v20 = vsel %vm162_vm3, %v163_v12, %v155_v11 }
  0x61   :  { %v316_v16 = vsel %vm314_vm15, %v147_v8, %v160_v14  ;;  %v161_v19 = vsel %vm159_vm2, %v147_v8, %v160_v14 }
  0x62   :  { %v320_v17 = vsel %vm313_vm0, %v316_v16, %v319_v15  ;;  %v165_v21 = vsel %vm158_vm4, %v161_v19, %v164_v20 }
  0x63   :  { %v321_v18 = vsel %vm156_vm1, nan, %v320_v17  ;;  %v166_v22 = vsel %vm156_vm1, nan, %v165_v21 }
  0x64   :  { %342 = vperm.xlu1 %455, %v321_v18   ;;  %329 = vperm.xlu0 %454, %v321_v18  }
  0x65   :  { %355 = vperm.xlu2 %456, %v321_v18  }
  0x6c   :  { %346 = vperm.xlu1 %455, %v166_v22   ;;  %334 = vperm.xlu0 %454, %v166_v22  }
  0x6d   :  { %359 = vperm.xlu2 %456, %v166_v22  }
  0x74   :  { %458 = vset.pattern.permute.xlu1 %v468_v23  ;;  %457 = vset.pattern.permute.xlu0 %v468_v23 }
  0x75   :  { %371 = vperm.xlu1 %458, %v166_v22   ;;  %367 = vperm.xlu0 %457, %v321_v18  }
  0xbf   :  { %v356_v34 = vpop.permute.xlu2 %355 }
  0xc7   :  { %v360_v42 = vpop.permute.xlu2 %359 }
  0xc8   :  { %v362_v31 = vsel %vm353_vm7, %v356_v34, %v360_v42 }
  0xd6   :  { %v343_v32 = vpop.permute.xlu1 %342  ;;  %v330_v33 = vpop.permute.xlu0 %329 }
  0xde   :  { %v347_v37 = vpop.permute.xlu1 %346  ;;  %v335_v38 = vpop.permute.xlu0 %334 }
  0xdf   :  { %v349_v39 = vsel %vm340_vm5, %v343_v32, %v347_v37  ;;  %v337_v40 = vsel %vm326_vm6, %v330_v33, %v335_v38 }
  0xe0   :  { %v350_v43 = vmul.f32 %v349_v39, %v337_v40 }
  0xe2   :  { %v363_v45 = vmul.f32 %v362_v31, %v350_v43 }
  0xe7   :  { %v372_v44 = vpop.permute.xlu1 %371  ;;  %v368_v46 = vpop.permute.xlu0 %367 }
  0xe8   :  { %v374_v47 = vsel %vm365_vm8, %v368_v46, %v372_v44 }
  0xe9   :  { %v375_v48 = vmul.f32 %v374_v47, %v363_v45 }
  0xeb   :  { %442 = vmatmul.msk.f32.vlgmr.msra.gmra.mxu0 %vm382_vm9, %v375_v48 }
 0x168   :  { %v403_v51 = vpop.f32.mrf.mxu0 }
 0x169   :  { %v406_v52 = vmul.f32 %v403_v51, %v403_v51 }
 0x16b   :  { %443 = vmatmul.msk.f32.vlgmr.msra.gmra.mxu1 %vm407_vm10, %v406_v52 }
 0x1e8   :  { %v428_v53 = vpop.f32.mrf.mxu1 }
 0x1e9   :  { %431 = vst [vmem:[%s561_s2] sm:$0xff] %v428_v53 }

</bundles_post_ra>
